<compile_context>
chip_gen: v6e
topology: v6e:2x2x1
jax: 0.10.0
libtpu: 0.0.40
codegen_flags: <defaults>
</compile_context>

<pallas_src>
import functools

import jax
import jax.numpy as jnp
from jax.experimental import pallas as pl
from jax.experimental.pallas import tpu as pltpu

IGNORE_LABEL = -1
THRESH = 0.7
MIN_KEPT = 256
# Deterministic class-balance weights from the module's __init__ (use_weight=True).
CLASS_WEIGHT = (1.4543, 43.8739, 34.241, 47.3663, 27.4869)
NUM_CLASSES = len(CLASS_WEIGHT)

LANES = 128
VMEM_LIMIT_BYTES = 32 * 1024 * 1024   # explicit scoped-VMEM budget (safe on v5e/v6e/v7x)


def _round_up(x, m):
    return ((x + m - 1) // m) * m


# ----------------------------------------------------------------------------
# Kernel 1: per-pixel softmax stats on dense (S_TILE, 128) pixel planes.
#   logits_ref: (C, S_TILE, 128) f32   -- one dense plane per class
#   label_ref : (S_TILE, 128)    int32
#   pred_ref  : (S_TILE, 128)    f32   softmax prob at the label (2.0 if ignored)
#   wnll_ref  : (S_TILE, 128)    f32   class_weight * NLL        (0 if ignored)
#   w_ref     : (S_TILE, 128)    f32   class_weight              (0 if ignored)
# class_weight is a compile-time Python tuple (no per-step DMA).
# ----------------------------------------------------------------------------
def _softmax_stats_kernel(logits_ref, label_ref, pred_ref, wnll_ref, w_ref, *,
                          ignore_label, class_weight):
    num_classes = len(class_weight)
    lab = label_ref[...]                                      # (S, 128) int32

    # Sweep 1: running max over the class planes (plane-wise VPU max).
    m = logits_ref[0].astype(jnp.float32)
    for ci in range(1, num_classes):
        m = jnp.maximum(m, logits_ref[ci].astype(jnp.float32))

    # Sweep 2: running sum-exp + logit-at-label gather + class-weight select.
    # Unrolled over the small static class count; only ~3-4 carried planes so
    # the compiler can strip-mine the elementwise chain without heavy spilling.
    s = jnp.zeros_like(m)
    x_at_lab = jnp.zeros_like(m)
    wsel = jnp.zeros_like(m)
    for ci, cw in enumerate(class_weight):
        xc = logits_ref[ci].astype(jnp.float32) - m
        s = s + jnp.exp(xc)
        is_c = lab == ci
        x_at_lab = jnp.where(is_c, xc, x_at_lab)
        wsel = jnp.where(is_c, jnp.float32(cw), wsel)

    nll = jnp.log(s) - x_at_lab                               # -log softmax at label
    p_at_lab = jnp.exp(-nll)                                  # softmax prob at label (EUP)
    valid = lab != ignore_label

    # Ignored / padded pixels: pred = 2.0 (> any softmax prob -> never forces a
    # keep); wsel is already 0 for them so w*nll and w need no extra select.
    pred_ref[...] = jnp.where(valid, p_at_lab, jnp.float32(2.0))
    wnll_ref[...] = wsel * nll
    w_ref[...] = wsel


# ----------------------------------------------------------------------------
# Kernel 2: OHEM-masked, class-weighted partial sums accumulated into
# VMEM-resident output blocks.  Threshold is an SMEM scalar.
# Grid = (split, N, pixel_tiles_per_split); the first two axes are "parallel"
# (megacore-shardable on v7x even at N=1), the pixel axis is the "arbitrary"
# accumulation axis (reduction axis last).
# ----------------------------------------------------------------------------
def _ohem_reduce_kernel(thr_ref, pred_ref, wnll_ref, w_ref, num_ref, den_ref):
    @pl.when(pl.program_id(2) == 0)
    def _():
        num_ref[...] = jnp.zeros_like(num_ref)
        den_ref[...] = jnp.zeros_like(den_ref)

    kept = pred_ref[...] <= thr_ref[0, 0]
    # Class weights are strictly positive, so w == 0 (ignored / padded pixels)
    # already zeroes both sums -- no extra validity term needed.
    num_ref[...] += jnp.where(kept, wnll_ref[...], jnp.float32(0.0))
    den_ref[...] += jnp.where(kept, w_ref[...], jnp.float32(0.0))


def _kth_smallest(pred_flat, k):
    """Exact k-th smallest via a two-stage top_k (per-chunk, then global)."""
    total = pred_flat.shape[0]
    chunk_len = None
    for cl in (8192, 4096, 2048, 1024, 512, 256):
        if cl >= k and total % cl == 0 and total // cl > 1:
            chunk_len = cl
            break
    if chunk_len is None:
        neg, _ = jax.lax.top_k(-pred_flat, k)
    else:
        cand, _ = jax.lax.top_k(-pred_flat.reshape(total // chunk_len, chunk_len), k)
        neg, _ = jax.lax.top_k(cand.reshape(-1), k)
    return -neg[k - 1]


def softmax_ce_ohem_loss(predict_nchw, target,
                         ignore_label=IGNORE_LABEL, thresh=THRESH,
                         min_kept=MIN_KEPT, class_weight=CLASS_WEIGHT,
                         tile_rows=1024, megacore_split=2):
    n, c, h, w = predict_nchw.shape
    assert target.shape == (n, h, w)
    assert len(class_weight) == c
    hw = h * w
    s_rows = -(-hw // LANES)                       # number of 128-pixel rows

    # Tile sizing: target ~128K pixels (1024 rows x 128 lanes) per grid step so
    # each step moves a few MiB of HBM traffic (>= ~2-3 us even on v5e) and the
    # ~0.35 us/step grid overhead stays <10%.  Shrink when the image is small or
    # when padding to a multiple of (tile * split) rows would blow up traffic.
    split = max(1, int(megacore_split))
    s_tile = max(8, min((int(tile_rows) // 8) * 8, _round_up(s_rows, 8)))
    while s_tile > 8 and (_round_up(s_rows, s_tile * split) - s_rows
                          > max(s_rows // 8, 2 * s_tile)):
        s_tile = max(8, ((s_tile // 2) // 8) * 8)
    rows_pad = _round_up(s_rows, s_tile * split)
    tiles_total = rows_pad // s_tile
    tiles_per_split = tiles_total // split

    # NCHW -> (N, C, rows, 128): pure reshape + zero-pad, no transpose pass.
    logits = predict_nchw.reshape(n, c, hw).astype(jnp.float32)
    labels = target.reshape(n, hw).astype(jnp.int32)
    pad = rows_pad * LANES - hw
    if pad:
        logits = jnp.pad(logits, ((0, 0), (0, 0), (0, pad)))
        labels = jnp.pad(labels, ((0, 0), (0, pad)), constant_values=ignore_label)
    logits = logits.reshape(n, c, rows_pad, LANES)
    labels = labels.reshape(n, rows_pad, LANES)

    cw = tuple(float(v) for v in class_weight)

    # --- Pass 1: per-pixel pred / w*nll / w as dedicated contiguous outputs ---
    pix_spec = pl.BlockSpec((None, s_tile, LANES), lambda ni, pi: (ni, pi, 0))
    pred, wnll, wv = pl.pallas_call(
        functools.partial(_softmax_stats_kernel,
                          ignore_label=int(ignore_label), class_weight=cw),
        out_shape=(jax.ShapeDtypeStruct((n, rows_pad, LANES), jnp.float32),) * 3,
        grid_spec=pltpu.PrefetchScalarGridSpec(
            num_scalar_prefetch=0,
            grid=(n, tiles_total),
            in_specs=[
                pl.BlockSpec((None, c, s_tile, LANES), lambda ni, pi: (ni, 0, pi, 0)),
                pix_spec,
            ],
            out_specs=[pix_spec, pix_spec, pix_spec]),
        compiler_params=pltpu.CompilerParams(
            dimension_semantics=("parallel", "parallel"),
            vmem_limit_bytes=VMEM_LIMIT_BYTES),
    )(logits, labels)

    # --- OHEM threshold selection (XLA glue) ---
    # TODO(synk): the k-th smallest prob has no clean in-kernel Pallas
    # equivalent; it stays in XLA as a two-stage jax.lax.top_k behind lax.cond.
    pred_flat = pred.reshape(-1)                    # contiguous view (no strided copy)
    num_valid = jnp.sum((target != ignore_label).astype(jnp.int32))
    thresh_f = jnp.float32(thresh)
    total = pred_flat.shape[0]
    if min_kept > 0:
        k = int(min(int(min_kept), total))
        # The k-th smallest only matters when fewer than k pixels already sit
        # below `thresh` (otherwise max(thresh, kth) == thresh): count cheaply
        # and skip the top_k in the common "plenty of hard pixels" regime.
        n_easy = jnp.sum((pred_flat <= thresh_f).astype(jnp.int32))
        kth = jax.lax.cond(n_easy >= k,
                           lambda p: thresh_f,
                           lambda p: _kth_smallest(p, k),
                           pred_flat)
        thr_ohem = jnp.maximum(thresh_f, kth)
    else:
        thr_ohem = thresh_f
    # min_kept >= num_valid  ->  the reference keeps every valid pixel.
    threshold = jnp.where(num_valid > min_kept, thr_ohem, jnp.float32(2.0))
    threshold = threshold.reshape(1, 1).astype(jnp.float32)

    # --- Pass 2: masked weighted partial sums (VMEM-resident accumulators) ---
    def _in_map(si, ni, pi):
        return (ni, si * tiles_per_split + pi, 0)

    def _acc_map(si, ni, pi):
        return (si, ni, 0, 0)

    in_pix = pl.BlockSpec((None, s_tile, LANES), _in_map)
    acc_spec = pl.BlockSpec((None, None, s_tile, LANES), _acc_map)

    num_part, den_part = pl.pallas_call(
        _ohem_reduce_kernel,
        out_shape=(jax.ShapeDtypeStruct((split, n, s_tile, LANES), jnp.float32),) * 2,
        grid_spec=pltpu.PrefetchScalarGridSpec(
            num_scalar_prefetch=0,
            grid=(split, n, tiles_per_split),
            in_specs=[
                pl.BlockSpec(memory_space=pltpu.MemorySpace.SMEM),   # threshold scalar
                in_pix, in_pix, in_pix,
            ],
            out_specs=[acc_spec, acc_spec]),
        compiler_params=pltpu.CompilerParams(
            dimension_semantics=("parallel", "parallel", "arbitrary"),
            vmem_limit_bytes=VMEM_LIMIT_BYTES),
    )(threshold, pred, wnll, wv)

    num = jnp.sum(num_part)
    den = jnp.sum(den_part)
    # NOTE: 0/0 -> NaN when every pixel is ignored / nothing is kept, matching
    # the un-guarded PyTorch reference behavior.
    return num / den


# Pure-JAX reference (mirrors the PyTorch/numpy semantics) for a sanity check.
def _reference_loss(predict_nchw, target,
                    ignore_label=IGNORE_LABEL, thresh=THRESH,
                    min_kept=MIN_KEPT, class_weight=CLASS_WEIGHT):
    n, c, h, w = predict_nchw.shape
    cw = jnp.array(class_weight, dtype=jnp.float32)
    x = jnp.transpose(predict_nchw, (0, 2, 3, 1)).reshape(-1, c).astype(jnp.float32)
    lab = target.reshape(-1).astype(jnp.int32)
    log_sm = jax.nn.log_softmax(x, axis=-1)
    prob = jnp.exp(log_sm)
    valid = lab != ignore_label
    safe_lab = jnp.where(valid, lab, 0)
    p = prob[jnp.arange(x.shape[0]), safe_lab]
    p = jnp.where(valid, p, 2.0)
    num_valid = jnp.sum(valid.astype(jnp.int32))
    sorted_p = jnp.sort(p)
    if min_kept > 0:
        k_idx = jnp.clip(jnp.minimum(min_kept, num_valid) - 1, 0, x.shape[0] - 1)
        thr = jnp.maximum(jnp.float32(thresh), sorted_p[k_idx])
    else:
        thr = jnp.float32(thresh)
    threshold = jnp.where(num_valid > min_kept, thr, jnp.float32(2.0))
    kept = valid & (p <= threshold)
    nll = -log_sm[jnp.arange(x.shape[0]), safe_lab]
    wv = cw[safe_lab]
    num = jnp.sum(jnp.where(kept, wv * nll, 0.0))
    den = jnp.sum(jnp.where(kept, wv, 0.0))
    return num / den


if __name__ == "__main__":
    key = jax.random.PRNGKey(0)
    k1, k2 = jax.random.split(key)
    N, C, H, W = 2, NUM_CLASSES, 16, 16          # predict: (2, 5, 16, 16)
    predict = jax.random.normal(k1, (N, C, H, W), dtype=jnp.float32)
    # labels in [-1, C): -1 is the ignore label
    target = jax.random.randint(k2, (N, H, W), minval=-1, maxval=C, dtype=jnp.int32)

    configs = (
        dict(thresh=0.7, min_kept=256),      # OHEM branch, top_k skipped (enough easy pixels)
        dict(thresh=0.05, min_kept=384),     # OHEM branch, two-stage top_k exercised
        dict(thresh=0.7, min_kept=100000),   # min_kept >= num_valid -> keep all valid pixels
    )
    for cfg in configs:
        fn = jax.jit(functools.partial(softmax_ce_ohem_loss, **cfg))
        loss = jax.block_until_ready(fn(predict, target))
        ref = jax.block_until_ready(_reference_loss(predict, target, **cfg))
        assert jnp.isfinite(loss), f"non-finite loss {loss} for {cfg}"
        assert jnp.allclose(loss, ref, rtol=1e-4, atol=1e-4), f"{cfg}: {loss} vs {ref}"

    print("KERNEL_OK")
</pallas_src>

<mosaic_0001>
module attributes {stable_mosaic.version = 11 : i64} {
  func.func @_softmax_stats_kernel(%arg0: i32, %arg1: i32, %arg2: memref<1x5x8x128xf32, #tpu.memory_space<vmem>>, %arg3: memref<1x8x128xi32, #tpu.memory_space<vmem>>, %arg4: memref<1x8x128xf32, #tpu.memory_space<vmem>>, %arg5: memref<1x8x128xf32, #tpu.memory_space<vmem>>, %arg6: memref<1x8x128xf32, #tpu.memory_space<vmem>>) attributes {dimension_semantics = [#tpu.dimension_semantics<parallel>, #tpu.dimension_semantics<parallel>], iteration_bounds = array<i64: 2, 2>, scalar_prefetch = 0 : i64, scratch_operands = 0 : i64, tpu.core_type = #tpu.core_type<tc>, window_params = [{transform_indices = @transform_0, window_bounds = array<i64: 1, 5, 8, 128>}, {transform_indices = @transform_1, window_bounds = array<i64: 1, 8, 128>}, {transform_indices = @transform_2, window_bounds = array<i64: 1, 8, 128>}, {transform_indices = @transform_3, window_bounds = array<i64: 1, 8, 128>}, {transform_indices = @transform_4, window_bounds = array<i64: 1, 8, 128>}]} {
    %c0 = arith.constant 0 : index
    %c0_0 = arith.constant 0 : index
    %c0_1 = arith.constant 0 : index
    %0 = vector.load %arg3[%c0, %c0_0, %c0_1] : memref<1x8x128xi32, #tpu.memory_space<vmem>>, vector<1x8x128xi32>
    %1 = vector.shape_cast %0 : vector<1x8x128xi32> to vector<8x128xi32>
    %c0_2 = arith.constant 0 : index
    %c0_3 = arith.constant 0 : index
    %c0_4 = arith.constant 0 : index
    %c0_5 = arith.constant 0 : index
    %2 = vector.load %arg2[%c0_2, %c0_3, %c0_4, %c0_5] : memref<1x5x8x128xf32, #tpu.memory_space<vmem>>, vector<1x1x8x128xf32>
    %3 = vector.shape_cast %2 : vector<1x1x8x128xf32> to vector<8x128xf32>
    %c0_6 = arith.constant 0 : index
    %c1 = arith.constant 1 : index
    %c0_7 = arith.constant 0 : index
    %c0_8 = arith.constant 0 : index
    %4 = vector.load %arg2[%c0_6, %c1, %c0_7, %c0_8] : memref<1x5x8x128xf32, #tpu.memory_space<vmem>>, vector<1x1x8x128xf32>
    %5 = vector.shape_cast %4 : vector<1x1x8x128xf32> to vector<8x128xf32>
    %6 = arith.maximumf %3, %5 : vector<8x128xf32>
    %c0_9 = arith.constant 0 : index
    %c2 = arith.constant 2 : index
    %c0_10 = arith.constant 0 : index
    %c0_11 = arith.constant 0 : index
    %7 = vector.load %arg2[%c0_9, %c2, %c0_10, %c0_11] : memref<1x5x8x128xf32, #tpu.memory_space<vmem>>, vector<1x1x8x128xf32>
    %8 = vector.shape_cast %7 : vector<1x1x8x128xf32> to vector<8x128xf32>
    %9 = arith.maximumf %6, %8 : vector<8x128xf32>
    %c0_12 = arith.constant 0 : index
    %c3 = arith.constant 3 : index
    %c0_13 = arith.constant 0 : index
    %c0_14 = arith.constant 0 : index
    %10 = vector.load %arg2[%c0_12, %c3, %c0_13, %c0_14] : memref<1x5x8x128xf32, #tpu.memory_space<vmem>>, vector<1x1x8x128xf32>
    %11 = vector.shape_cast %10 : vector<1x1x8x128xf32> to vector<8x128xf32>
    %12 = arith.maximumf %9, %11 : vector<8x128xf32>
    %c0_15 = arith.constant 0 : index
    %c4 = arith.constant 4 : index
    %c0_16 = arith.constant 0 : index
    %c0_17 = arith.constant 0 : index
    %13 = vector.load %arg2[%c0_15, %c4, %c0_16, %c0_17] : memref<1x5x8x128xf32, #tpu.memory_space<vmem>>, vector<1x1x8x128xf32>
    %14 = vector.shape_cast %13 : vector<1x1x8x128xf32> to vector<8x128xf32>
    %15 = arith.maximumf %12, %14 : vector<8x128xf32>
    %cst = arith.constant 0.000000e+00 : f32
    %16 = vector.broadcast %cst : f32 to vector<8x128xf32>
    %cst_18 = arith.constant 0.000000e+00 : f32
    %17 = vector.broadcast %cst_18 : f32 to vector<8x128xf32>
    %cst_19 = arith.constant 0.000000e+00 : f32
    %18 = vector.broadcast %cst_19 : f32 to vector<8x128xf32>
    %c0_20 = arith.constant 0 : index
    %c0_21 = arith.constant 0 : index
    %c0_22 = arith.constant 0 : index
    %c0_23 = arith.constant 0 : index
    %19 = vector.load %arg2[%c0_20, %c0_21, %c0_22, %c0_23] : memref<1x5x8x128xf32, #tpu.memory_space<vmem>>, vector<1x1x8x128xf32>
    %20 = vector.shape_cast %19 : vector<1x1x8x128xf32> to vector<8x128xf32>
    %21 = arith.subf %20, %15 : vector<8x128xf32>
    %22 = math.exp %21 : vector<8x128xf32>
    %23 = arith.addf %16, %22 : vector<8x128xf32>
    %c0_i32 = arith.constant 0 : i32
    %24 = vector.broadcast %c0_i32 : i32 to vector<8x128xi32>
    %25 = arith.cmpi eq, %1, %24 : vector<8x128xi32>
    %26 = arith.select %25, %21, %17 : vector<8x128xi1>, vector<8x128xf32>
    %cst_24 = arith.constant 1.454300e+00 : f32
    %27 = vector.broadcast %cst_24 : f32 to vector<8x128xf32>
    %28 = arith.select %25, %27, %18 : vector<8x128xi1>, vector<8x128xf32>
    %c0_25 = arith.constant 0 : index
    %c1_26 = arith.constant 1 : index
    %c0_27 = arith.constant 0 : index
    %c0_28 = arith.constant 0 : index
    %29 = vector.load %arg2[%c0_25, %c1_26, %c0_27, %c0_28] : memref<1x5x8x128xf32, #tpu.memory_space<vmem>>, vector<1x1x8x128xf32>
    %30 = vector.shape_cast %29 : vector<1x1x8x128xf32> to vector<8x128xf32>
    %31 = arith.subf %30, %15 : vector<8x128xf32>
    %32 = math.exp %31 : vector<8x128xf32>
    %33 = arith.addf %23, %32 : vector<8x128xf32>
    %c1_i32 = arith.constant 1 : i32
    %34 = vector.broadcast %c1_i32 : i32 to vector<8x128xi32>
    %35 = arith.cmpi eq, %1, %34 : vector<8x128xi32>
    %36 = arith.select %35, %31, %26 : vector<8x128xi1>, vector<8x128xf32>
    %cst_29 = arith.constant 4.387390e+01 : f32
    %37 = vector.broadcast %cst_29 : f32 to vector<8x128xf32>
    %38 = arith.select %35, %37, %28 : vector<8x128xi1>, vector<8x128xf32>
    %c0_30 = arith.constant 0 : index
    %c2_31 = arith.constant 2 : index
    %c0_32 = arith.constant 0 : index
    %c0_33 = arith.constant 0 : index
    %39 = vector.load %arg2[%c0_30, %c2_31, %c0_32, %c0_33] : memref<1x5x8x128xf32, #tpu.memory_space<vmem>>, vector<1x1x8x128xf32>
    %40 = vector.shape_cast %39 : vector<1x1x8x128xf32> to vector<8x128xf32>
    %41 = arith.subf %40, %15 : vector<8x128xf32>
    %42 = math.exp %41 : vector<8x128xf32>
    %43 = arith.addf %33, %42 : vector<8x128xf32>
    %c2_i32 = arith.constant 2 : i32
    %44 = vector.broadcast %c2_i32 : i32 to vector<8x128xi32>
    %45 = arith.cmpi eq, %1, %44 : vector<8x128xi32>
    %46 = arith.select %45, %41, %36 : vector<8x128xi1>, vector<8x128xf32>
    %cst_34 = arith.constant 3.424100e+01 : f32
    %47 = vector.broadcast %cst_34 : f32 to vector<8x128xf32>
    %48 = arith.select %45, %47, %38 : vector<8x128xi1>, vector<8x128xf32>
    %c0_35 = arith.constant 0 : index
    %c3_36 = arith.constant 3 : index
    %c0_37 = arith.constant 0 : index
    %c0_38 = arith.constant 0 : index
    %49 = vector.load %arg2[%c0_35, %c3_36, %c0_37, %c0_38] : memref<1x5x8x128xf32, #tpu.memory_space<vmem>>, vector<1x1x8x128xf32>
    %50 = vector.shape_cast %49 : vector<1x1x8x128xf32> to vector<8x128xf32>
    %51 = arith.subf %50, %15 : vector<8x128xf32>
    %52 = math.exp %51 : vector<8x128xf32>
    %53 = arith.addf %43, %52 : vector<8x128xf32>
    %c3_i32 = arith.constant 3 : i32
    %54 = vector.broadcast %c3_i32 : i32 to vector<8x128xi32>
    %55 = arith.cmpi eq, %1, %54 : vector<8x128xi32>
    %56 = arith.select %55, %51, %46 : vector<8x128xi1>, vector<8x128xf32>
    %cst_39 = arith.constant 4.736630e+01 : f32
    %57 = vector.broadcast %cst_39 : f32 to vector<8x128xf32>
    %58 = arith.select %55, %57, %48 : vector<8x128xi1>, vector<8x128xf32>
    %c0_40 = arith.constant 0 : index
    %c4_41 = arith.constant 4 : index
    %c0_42 = arith.constant 0 : index
    %c0_43 = arith.constant 0 : index
    %59 = vector.load %arg2[%c0_40, %c4_41, %c0_42, %c0_43] : memref<1x5x8x128xf32, #tpu.memory_space<vmem>>, vector<1x1x8x128xf32>
    %60 = vector.shape_cast %59 : vector<1x1x8x128xf32> to vector<8x128xf32>
    %61 = arith.subf %60, %15 : vector<8x128xf32>
    %62 = math.exp %61 : vector<8x128xf32>
    %63 = arith.addf %53, %62 : vector<8x128xf32>
    %c4_i32 = arith.constant 4 : i32
    %64 = vector.broadcast %c4_i32 : i32 to vector<8x128xi32>
    %65 = arith.cmpi eq, %1, %64 : vector<8x128xi32>
    %66 = arith.select %65, %61, %56 : vector<8x128xi1>, vector<8x128xf32>
    %cst_44 = arith.constant 2.748690e+01 : f32
    %67 = vector.broadcast %cst_44 : f32 to vector<8x128xf32>
    %68 = arith.select %65, %67, %58 : vector<8x128xi1>, vector<8x128xf32>
    %69 = math.log %63 : vector<8x128xf32>
    %70 = arith.subf %69, %66 : vector<8x128xf32>
    %cst_45 = arith.constant 0.000000e+00 : f32
    %71 = vector.broadcast %cst_45 : f32 to vector<8x128xf32>
    %72 = arith.subf %71, %70 : vector<8x128xf32>
    %73 = math.exp %72 : vector<8x128xf32>
    %c-1_i32 = arith.constant -1 : i32
    %74 = vector.broadcast %c-1_i32 : i32 to vector<8x128xi32>
    %75 = arith.cmpi ne, %1, %74 : vector<8x128xi32>
    %cst_46 = arith.constant 2.000000e+00 : f32
    %76 = vector.broadcast %cst_46 : f32 to vector<8x128xf32>
    %77 = arith.select %75, %73, %76 : vector<8x128xi1>, vector<8x128xf32>
    %c0_47 = arith.constant 0 : index
    %c0_48 = arith.constant 0 : index
    %c0_49 = arith.constant 0 : index
    %78 = vector.load %arg4[%c0_47, %c0_48, %c0_49] : memref<1x8x128xf32, #tpu.memory_space<vmem>>, vector<1x8x128xf32>
    %79 = vector.shape_cast %78 : vector<1x8x128xf32> to vector<8x128xf32>
    %80 = vector.shape_cast %77 : vector<8x128xf32> to vector<1x8x128xf32>
    tpu.vector_store %arg4[%c0_47, %c0_48, %c0_49], %80 {strides = array<i32>} : memref<1x8x128xf32, #tpu.memory_space<vmem>>, vector<1x8x128xf32>,
    %81 = arith.mulf %68, %70 : vector<8x128xf32>
    %c0_50 = arith.constant 0 : index
    %c0_51 = arith.constant 0 : index
    %c0_52 = arith.constant 0 : index
    %82 = vector.load %arg5[%c0_50, %c0_51, %c0_52] : memref<1x8x128xf32, #tpu.memory_space<vmem>>, vector<1x8x128xf32>
    %83 = vector.shape_cast %82 : vector<1x8x128xf32> to vector<8x128xf32>
    %84 = vector.shape_cast %81 : vector<8x128xf32> to vector<1x8x128xf32>
    tpu.vector_store %arg5[%c0_50, %c0_51, %c0_52], %84 {strides = array<i32>} : memref<1x8x128xf32, #tpu.memory_space<vmem>>, vector<1x8x128xf32>,
    %c0_53 = arith.constant 0 : index
    %c0_54 = arith.constant 0 : index
    %c0_55 = arith.constant 0 : index
    %85 = vector.load %arg6[%c0_53, %c0_54, %c0_55] : memref<1x8x128xf32, #tpu.memory_space<vmem>>, vector<1x8x128xf32>
    %86 = vector.shape_cast %85 : vector<1x8x128xf32> to vector<8x128xf32>
    %87 = vector.shape_cast %68 : vector<8x128xf32> to vector<1x8x128xf32>
    tpu.vector_store %arg6[%c0_53, %c0_54, %c0_55], %87 {strides = array<i32>} : memref<1x8x128xf32, #tpu.memory_space<vmem>>, vector<1x8x128xf32>,
    return
  }
  func.func @transform_0(%arg0: i32, %arg1: i32) -> (i32, i32, i32, i32) {
    %c0_i32 = arith.constant 0 : i32
    %c0_i32_0 = arith.constant 0 : i32
    %c0_i32_1 = arith.constant 0 : i32
    return %arg0, %c0_i32, %arg1, %c0_i32_0 : i32, i32, i32, i32
  }
  func.func @transform_1(%arg0: i32, %arg1: i32) -> (i32, i32, i32) {
    %c0_i32 = arith.constant 0 : i32
    %c0_i32_0 = arith.constant 0 : i32
    return %arg0, %arg1, %c0_i32 : i32, i32, i32
  }
  func.func @transform_2(%arg0: i32, %arg1: i32) -> (i32, i32, i32) {
    %c0_i32 = arith.constant 0 : i32
    %c0_i32_0 = arith.constant 0 : i32
    return %arg0, %arg1, %c0_i32 : i32, i32, i32
  }
  func.func @transform_3(%arg0: i32, %arg1: i32) -> (i32, i32, i32) {
    %c0_i32 = arith.constant 0 : i32
    %c0_i32_0 = arith.constant 0 : i32
    return %arg0, %arg1, %c0_i32 : i32, i32, i32
  }
  func.func @transform_4(%arg0: i32, %arg1: i32) -> (i32, i32, i32) {
    %c0_i32 = arith.constant 0 : i32
    %c0_i32_0 = arith.constant 0 : i32
    return %arg0, %arg1, %c0_i32 : i32, i32, i32
  }
}

module attributes {stable_mosaic.version = 11 : i64} {
  func.func @_ohem_reduce_kernel(%arg0: i32, %arg1: i32, %arg2: i32, %arg3: memref<1x1xf32, #tpu.memory_space<smem>>, %arg4: memref<1x8x128xf32, #tpu.memory_space<vmem>>, %arg5: memref<1x8x128xf32, #tpu.memory_space<vmem>>, %arg6: memref<1x8x128xf32, #tpu.memory_space<vmem>>, %arg7: memref<1x1x8x128xf32, #tpu.memory_space<vmem>>, %arg8: memref<1x1x8x128xf32, #tpu.memory_space<vmem>>) attributes {dimension_semantics = [#tpu.dimension_semantics<parallel>, #tpu.dimension_semantics<parallel>, #tpu.dimension_semantics<arbitrary>], iteration_bounds = array<i64: 2, 2, 1>, scalar_prefetch = 0 : i64, scratch_operands = 0 : i64, tpu.core_type = #tpu.core_type<tc>, window_params = [{transform_indices = @transform_0, window_bounds = array<i64: 1, 1>}, {transform_indices = @transform_1, window_bounds = array<i64: 1, 8, 128>}, {transform_indices = @transform_2, window_bounds = array<i64: 1, 8, 128>}, {transform_indices = @transform_3, window_bounds = array<i64: 1, 8, 128>}, {transform_indices = @transform_4, window_bounds = array<i64: 1, 1, 8, 128>}, {transform_indices = @transform_5, window_bounds = array<i64: 1, 1, 8, 128>}]} {
    %c0_i32 = arith.constant 0 : i32
    %0 = arith.cmpi eq, %arg2, %c0_i32 : i32
    %1 = arith.extui %0 : i1 to i32
    %c0_i32_0 = arith.constant 0 : i32
    %2 = arith.cmpi ne, %1, %c0_i32_0 : i32
    scf.if %2 {
      %cst_28 = arith.constant 0.000000e+00 : f32
      %28 = vector.broadcast %cst_28 : f32 to vector<8x128xf32>
      %c0_29 = arith.constant 0 : index
      %c0_30 = arith.constant 0 : index
      %c0_31 = arith.constant 0 : index
      %c0_32 = arith.constant 0 : index
      %29 = vector.load %arg7[%c0_29, %c0_30, %c0_31, %c0_32] : memref<1x1x8x128xf32, #tpu.memory_space<vmem>>, vector<1x1x8x128xf32>
      %30 = vector.shape_cast %29 : vector<1x1x8x128xf32> to vector<8x128xf32>
      %31 = vector.shape_cast %28 : vector<8x128xf32> to vector<1x1x8x128xf32>
      tpu.vector_store %arg7[%c0_29, %c0_30, %c0_31, %c0_32], %31 {strides = array<i32>} : memref<1x1x8x128xf32, #tpu.memory_space<vmem>>, vector<1x1x8x128xf32>,
      %cst_33 = arith.constant 0.000000e+00 : f32
      %32 = vector.broadcast %cst_33 : f32 to vector<8x128xf32>
      %c0_34 = arith.constant 0 : index
      %c0_35 = arith.constant 0 : index
      %c0_36 = arith.constant 0 : index
      %c0_37 = arith.constant 0 : index
      %33 = vector.load %arg8[%c0_34, %c0_35, %c0_36, %c0_37] : memref<1x1x8x128xf32, #tpu.memory_space<vmem>>, vector<1x1x8x128xf32>
      %34 = vector.shape_cast %33 : vector<1x1x8x128xf32> to vector<8x128xf32>
      %35 = vector.shape_cast %32 : vector<8x128xf32> to vector<1x1x8x128xf32>
      tpu.vector_store %arg8[%c0_34, %c0_35, %c0_36, %c0_37], %35 {strides = array<i32>} : memref<1x1x8x128xf32, #tpu.memory_space<vmem>>, vector<1x1x8x128xf32>,
    } else {
    }
    %c0 = arith.constant 0 : index
    %c0_1 = arith.constant 0 : index
    %c0_2 = arith.constant 0 : index
    %3 = vector.load %arg4[%c0, %c0_1, %c0_2] : memref<1x8x128xf32, #tpu.memory_space<vmem>>, vector<1x8x128xf32>
    %4 = vector.shape_cast %3 : vector<1x8x128xf32> to vector<8x128xf32>
    %c0_3 = arith.constant 0 : index
    %c0_4 = arith.constant 0 : index
    %5 = memref.load %arg3[%c0_3, %c0_4] : memref<1x1xf32, #tpu.memory_space<smem>>
    %6 = vector.broadcast %5 : f32 to vector<8x128xf32>
    %7 = arith.cmpf ole, %4, %6 : vector<8x128xf32>
    %c0_5 = arith.constant 0 : index
    %c0_6 = arith.constant 0 : index
    %c0_7 = arith.constant 0 : index
    %c0_8 = arith.constant 0 : index
    %8 = vector.load %arg7[%c0_5, %c0_6, %c0_7, %c0_8] : memref<1x1x8x128xf32, #tpu.memory_space<vmem>>, vector<1x1x8x128xf32>
    %9 = vector.shape_cast %8 : vector<1x1x8x128xf32> to vector<8x128xf32>
    %c0_9 = arith.constant 0 : index
    %c0_10 = arith.constant 0 : index
    %c0_11 = arith.constant 0 : index
    %10 = vector.load %arg5[%c0_9, %c0_10, %c0_11] : memref<1x8x128xf32, #tpu.memory_space<vmem>>, vector<1x8x128xf32>
    %11 = vector.shape_cast %10 : vector<1x8x128xf32> to vector<8x128xf32>
    %cst = arith.constant 0.000000e+00 : f32
    %12 = vector.broadcast %cst : f32 to vector<8x128xf32>
    %13 = arith.select %7, %11, %12 : vector<8x128xi1>, vector<8x128xf32>
    %14 = arith.addf %9, %13 : vector<8x128xf32>
    %c0_12 = arith.constant 0 : index
    %c0_13 = arith.constant 0 : index
    %c0_14 = arith.constant 0 : index
    %c0_15 = arith.constant 0 : index
    %15 = vector.load %arg7[%c0_12, %c0_13, %c0_14, %c0_15] : memref<1x1x8x128xf32, #tpu.memory_space<vmem>>, vector<1x1x8x128xf32>
    %16 = vector.shape_cast %15 : vector<1x1x8x128xf32> to vector<8x128xf32>
    %17 = vector.shape_cast %14 : vector<8x128xf32> to vector<1x1x8x128xf32>
    tpu.vector_store %arg7[%c0_12, %c0_13, %c0_14, %c0_15], %17 {strides = array<i32>} : memref<1x1x8x128xf32, #tpu.memory_space<vmem>>, vector<1x1x8x128xf32>,
    %c0_16 = arith.constant 0 : index
    %c0_17 = arith.constant 0 : index
    %c0_18 = arith.constant 0 : index
    %c0_19 = arith.constant 0 : index
    %18 = vector.load %arg8[%c0_16, %c0_17, %c0_18, %c0_19] : memref<1x1x8x128xf32, #tpu.memory_space<vmem>>, vector<1x1x8x128xf32>
    %19 = vector.shape_cast %18 : vector<1x1x8x128xf32> to vector<8x128xf32>
    %c0_20 = arith.constant 0 : index
    %c0_21 = arith.constant 0 : index
    %c0_22 = arith.constant 0 : index
    %20 = vector.load %arg6[%c0_20, %c0_21, %c0_22] : memref<1x8x128xf32, #tpu.memory_space<vmem>>, vector<1x8x128xf32>
    %21 = vector.shape_cast %20 : vector<1x8x128xf32> to vector<8x128xf32>
    %cst_23 = arith.constant 0.000000e+00 : f32
    %22 = vector.broadcast %cst_23 : f32 to vector<8x128xf32>
    %23 = arith.select %7, %21, %22 : vector<8x128xi1>, vector<8x128xf32>
    %24 = arith.addf %19, %23 : vector<8x128xf32>
    %c0_24 = arith.constant 0 : index
    %c0_25 = arith.constant 0 : index
    %c0_26 = arith.constant 0 : index
    %c0_27 = arith.constant 0 : index
    %25 = vector.load %arg8[%c0_24, %c0_25, %c0_26, %c0_27] : memref<1x1x8x128xf32, #tpu.memory_space<vmem>>, vector<1x1x8x128xf32>
    %26 = vector.shape_cast %25 : vector<1x1x8x128xf32> to vector<8x128xf32>
    %27 = vector.shape_cast %24 : vector<8x128xf32> to vector<1x1x8x128xf32>
    tpu.vector_store %arg8[%c0_24, %c0_25, %c0_26, %c0_27], %27 {strides = array<i32>} : memref<1x1x8x128xf32, #tpu.memory_space<vmem>>, vector<1x1x8x128xf32>,
    return
  }
  func.func @transform_0(%arg0: i32, %arg1: i32, %arg2: i32) -> (i32, i32) {
    %c0_i32 = arith.constant 0 : i32
    %c0_i32_0 = arith.constant 0 : i32
    %c0_i32_1 = arith.constant 0 : i32
    return %c0_i32, %c0_i32_0 : i32, i32
  }
  func.func @transform_1(%arg0: i32, %arg1: i32, %arg2: i32) -> (i32, i32, i32) {
    %c1_i32 = arith.constant 1 : i32
    %0 = arith.muli %arg0, %c1_i32 : i32
    %1 = arith.addi %0, %arg2 : i32
    %c0_i32 = arith.constant 0 : i32
    %c0_i32_0 = arith.constant 0 : i32
    return %arg1, %1, %c0_i32 : i32, i32, i32
  }
  func.func @transform_2(%arg0: i32, %arg1: i32, %arg2: i32) -> (i32, i32, i32) {
    %c1_i32 = arith.constant 1 : i32
    %0 = arith.muli %arg0, %c1_i32 : i32
    %1 = arith.addi %0, %arg2 : i32
    %c0_i32 = arith.constant 0 : i32
    %c0_i32_0 = arith.constant 0 : i32
    return %arg1, %1, %c0_i32 : i32, i32, i32
  }
  func.func @transform_3(%arg0: i32, %arg1: i32, %arg2: i32) -> (i32, i32, i32) {
    %c1_i32 = arith.constant 1 : i32
    %0 = arith.muli %arg0, %c1_i32 : i32
    %1 = arith.addi %0, %arg2 : i32
    %c0_i32 = arith.constant 0 : i32
    %c0_i32_0 = arith.constant 0 : i32
    return %arg1, %1, %c0_i32 : i32, i32, i32
  }
  func.func @transform_4(%arg0: i32, %arg1: i32, %arg2: i32) -> (i32, i32, i32, i32) {
    %c0_i32 = arith.constant 0 : i32
    %c0_i32_0 = arith.constant 0 : i32
    %c0_i32_1 = arith.constant 0 : i32
    return %arg0, %arg1, %c0_i32, %c0_i32_0 : i32, i32, i32, i32
  }
  func.func @transform_5(%arg0: i32, %arg1: i32, %arg2: i32) -> (i32, i32, i32, i32) {
    %c0_i32 = arith.constant 0 : i32
    %c0_i32_0 = arith.constant 0 : i32
    %c0_i32_1 = arith.constant 0 : i32
    return %arg0, %arg1, %c0_i32, %c0_i32_0 : i32, i32, i32, i32
  }
}

</mosaic_0001>

<bundles_post_ra>
// kernel: softmax_ce_ohem_loss.2
= control target key start
LH: loop header
LB: loop body
LE: loop exit
PB: predicated region body
PF: predicated region fallthrough
CT: control target
= control target key end

     0   :  { %10 = vsyncpa [#allocation4], 0  ;;  %s1026_s0 = inlined_call_operand.vmem [shape: f32[2,5,16,128], index: 0, kind: input, shape index: {}]   ;;  %s1027_s1 = inlined_call_operand.vmem [shape: s32[2,16,128], index: 1, kind: input, shape index: {}]   ;;  %s1028_s2 = inlined_call_operand.hbm [shape: f32[2,16,128], index: 2, kind: output, shape index: {0}]   ;;  %s1029_s3 = inlined_call_operand.vmem [shape: f32[2,16,128], index: 3, kind: output, shape index: {1}]   ;;  %s1030_s4 = inlined_call_operand.vmem [shape: f32[2,16,128], index: 4, kind: output, shape index: {2}]  }
   0x1   :  { %12 = vsyncpa [#allocation4 + $0x1], 0  ;;  %s838_s15 = smov 0   ;;  %s840_s16 = smov 0  }
   0x2   :  { %s842_s17 = smov 0   ;;  %s844_s18 = smov 0  }
   0x3   :  { %s846_s19 = smov 0   ;;  %s848_s20 = smov 0  }
   0x4   :  { %s850_s21 = smov 0   ;;  %s852_s22 = smov 0  }
   0x5 LB: > { %s606_s23 = sadd.s32 4294967295, %s809_s22   ;;  %s607_s24 = sadd.s32 4294967294, %s809_s22   ;;  %s809_s22 = sphi %s852_s22, %s18_s22   ;;  %s805_s21 = sphi %s850_s21, %s1040_s21   ;;  %s801_s20 = sphi %s848_s20, %s1039_s20   ;;  %s797_s19 = sphi %s846_s19, %s1038_s19   ;;  %s793_s18 = sphi %s844_s18, %s1037_s18   ;;  %s789_s17 = sphi %s842_s17, %s1036_s17   ;;  %s785_s16 = sphi %s840_s16, %s1035_s16   ;;  %s781_s15 = sphi %s838_s15, %s1034_s15  }
   0x6   : > { %s27_s25 = sadd.s32 1, %s801_s20  ;;  %s30_s26 = sadd.s32 1, %s805_s21 }
   0x7   : > { %p28_p0 = scmp.ge.s32.totalorder %s27_s25, 2  ;;  %p46_p1 = scmp.ne.s32.totalorder %s789_s17, %s785_s16 }
   0x8   : > { %p47_p2 = scmp.eq.s32.totalorder %s809_s22, 0  ;;  %p106_p5 = scmp.eq.s32.totalorder %s606_s23, 3 }
   0x9   : > { %s1042_s25 = smov (%p28_p0, %s27_s25), 0  ;;  %s1044_s26 = smov (!%p28_p0, %s30_s26), %s805_s21 }
   0xa   : > { %s35_s27 = ssub.s32 %s801_s20, %s1042_s25  ;;  %p890_p3 = por %p47_p2, %p46_p1 }
   0xb   : > { %p32_p4 = scmp.ge.s32.totalorder %s1044_s26, 2  ;;  %p111_p6 = scmp.ne.s32.totalorder %s785_s16, %s781_s15 }
   0xc   : > { %p112_p7 = scmp.eq.s32.totalorder %s607_s24, 3  ;;  %p898_p8 = por %p106_p5, %p46_p1 }
   0xd   : > { %s1046_s26 = smov (%p32_p4, %s1044_s26), 0  ;;  %s39_s7 = sadd.s32 1, %s789_s17 }
   0xe   : > { %p902_p9 = por %p112_p7, %p111_p6  ;;  %s34_s5 = ssub.s32 %s805_s21, %s1046_s26 }
   0xf   : > { %s36_s6 = sor.u32 %s35_s27, %s34_s5  ;;  %p609_p11 = scmp.ge.s32.totalorder %s809_s22, 4 }
  0x10   : > { %p37_p10 = scmp.eq.s32.totalorder %s36_s6, 0 }
  0x11   : > { %184 = sbr.rel (%p609_p11) target bundleno = 32 (0x20), region = 16 }
  0x12   : > { %s910_s8 = scalar_select %p37_p10, %s789_s17, %s39_s7  }
  0x16   : > { %187 = sbr.rel (!%p890_p3) target bundleno = 32 (0x20), region = 20  ;;  %s189_s9 = sand.u32 (%p890_p3), 1, %s789_s17  }
  0x17   : > { %s629_s10 = smul.u32 (%p890_p3), 10, %s805_s21 }
  0x18   : > { %s628_s11 = smul.u32 (%p890_p3), 40, %s189_s9 }
  0x19   : > { %s193_s12 = sadd.s32 (%p890_p3), %s801_s20, %s629_s10 }
  0x1a   : > { %s610_s13 = sshll.u32 (%p890_p3), %s193_s12, 3  ;;  %s191_s27 = scalar_lea.vmem (%p890_p3), [#allocation2], %s628_s11 }
  0x1b   : > { %s195_s24 = scalar_lea.vmem %s1026_s0, %s610_s13 }
  0x1c   : > { %v232_v0 = vld [vmem:[%s195_s24] sm:$0xff]  ;;  %v234_v1 = vld [vmem:[%s195_s24 + $0x10] sm:$0xff] }
  0x1d   : > { %v236_v2 = vld [vmem:[%s195_s24 + $0x20] sm:$0xff]  ;;  %233 = vst [vmem:[%s191_s27] sm:$0xff] %v232_v0  ;;  %235 = vst [vmem:[%s191_s27 + $0x8] sm:$0xff] %v234_v1  ;;  %v238_v3 = vld [vmem:[%s195_s24 + $0x30] sm:$0xff] }
  0x1e   : > { %237 = vst [vmem:[%s191_s27 + $0x10] sm:$0xff] %v236_v2  ;;  %v240_v4 = vld [vmem:[%s195_s24 + $0x40] sm:$0xff]  ;;  %239 = vst [vmem:[%s191_s27 + $0x18] sm:$0xff] %v238_v3 }
  0x1f   : > { %241 = vst [vmem:[%s191_s27 + $0x20] sm:$0xff] %v240_v4 }
  0x20 PF: > { %p611_p12 = scmp.ge.s32.totalorder %s809_s22, 1  ;;  %p257_p13 = scmp.lt.s32.totalorder %s809_s22, 5 }
  0x22   : > { %p258_p0 = pnand %p611_p12, %p257_p13 }
  0x23   : > { %s924_s28 = sand.u32 (!%p258_p0), 1, %s785_s16   ;;  %p313_p1 = scmp.lt.s32.totalorder (!%p258_p0), %s797_s19, 1 }
  0x24   : > { %261 = sbr.rel (%p258_p0) target bundleno = 127 (0x7f), region = 62  ;;  %p315_p2 = scmp.lt.s32.totalorder (!%p258_p0), %s793_s18, 1 }
  0x25   : > { %s630_s5 = smul.u32 (!%p258_p0), 40, %s924_s28 }
  0x27   : > { %s266_s7 = scalar_lea.vmem (!%p258_p0), [#allocation2], %s630_s5 }
  0x29   : > { %s314_s6 = scalar_select %p313_p1, %s797_s19, 1  ;;  %v338_v5 = vld [vmem:[%s266_s7] sm:$0xff]  ;;  %v619_v6 = vld [vmem:[%s266_s7 + $0x8] sm:$0xff]  ;;  %v620_v7 = vld [vmem:[%s266_s7 + $0x10] sm:$0xff]  ;;  %v811_v15 = vmov 0.0  }
  0x2a   : > { %s316_s9 = scalar_select %p315_p2, %s793_s18, 1  ;;  %v341_v8 = vmax.f32 %v338_v5, %v619_v6  ;;  %v621_v9 = vld [vmem:[%s266_s7 + $0x18] sm:$0xff]  ;;  %v622_v11 = vld [vmem:[%s266_s7 + $0x20] sm:$0xff] }
  0x2b   : > { %s613_s10 = sshll.u32 %s314_s6, 1  ;;  %s399_s6 = scalar_lea.sflag [#allocation4], %s924_s28 }
  0x2c   : > { %s318_s11 = sadd.s32 %s613_s10, %s316_s9  ;;  %v344_v10 = vmax.f32 %v341_v8, %v620_v7  ;;  %s612_s10 = sshll.u32 %s924_s28, 3 }
  0x2d   : > { %s931_s12 = sshll.u32 %s318_s11, 3  ;;  %s624_s11 = sshll.u32 %s797_s19, 1 }
  0x2e   : > { %s320_s23 = scalar_lea.vmem %s1027_s1, %s931_s12  ;;  %v347_v12 = vmax.f32 %v344_v10, %v621_v9  ;;  %s336_s5 = scalar_lea.vmem %s1030_s4, %s931_s12 }
  0x2f   : > { %v937_v13 = vld [vmem:[%s320_s23] sm:$0xff]  ;;  %s328_s9 = scalar_lea.vmem %s1029_s3, %s931_s12  ;;  %s426_s13 = sadd.s32 %s793_s18, %s624_s11 }
  0x30   : > { %v350_v14 = vmax.f32 %v347_v12, %v622_v11  ;;  %vm355_vm0 = vcmp.eq.s32.totalorder %v937_v13, 0  ;;  %vm362_vm1 = vcmp.eq.s32.totalorder %v937_v13, 1  ;;  %vm369_vm2 = vcmp.eq.s32.totalorder %v937_v13, 2  ;;  %s292_s14 = scalar_lea.vmem [#allocation3], %s612_s10  ;;  %s625_s24 = sshll.u32 %s426_s13, 7 }
  0x31   : > { %v357_v16 = vsel %vm355_vm0, 1.4543, %v811_v15  ;;  %vm376_vm3 = vcmp.eq.s32.totalorder %v937_v13, 3  ;;  %vm383_vm4 = vcmp.eq.s32.totalorder %v937_v13, 4  ;;  %s430_s23 = sshll.u32 %s292_s14, 4  ;;  %vm392_vm5 = vcmp.ne.s32.totalorder %v937_v13, 4294967295  ;;  %s976_s23 = int_to_ptr.vmem [resolvable:$true] %s430_s23 }
  0x32   : > { %v351_v17 = vsub.f32 %v338_v5, %v350_v14  ;;  %v358_v18 = vsub.f32 %v619_v6, %v350_v14  ;;  %v365_v19 = vsub.f32 %v620_v7, %v350_v14  ;;  %v372_v20 = vsub.f32 %v621_v9, %v350_v14  ;;  %s717_s19 = scalar_lea.vmem %s976_s23, 128  ;;  %s812_s18 = smov [#allocation3]  }
  0x33   : > { %v379_v21 = vsub.f32 %v622_v11, %v350_v14  ;;  %v364_v22 = vsel %vm362_vm1, 43.8739, %v357_v16  ;;  %p718_p3 = scmp.ne.s32.totalorder %s976_s23, %s717_s19  ;;  %s721_s7 = sshll.u32 %s812_s18, 4  ;;  %s722_s7 = int_to_ptr.vmem [resolvable:$false] %s721_s7 }
  0x34   : > { %v352_v23 = vmul.f32 1.442695, %v351_v17  ;;  %v359_v24 = vmul.f32 1.442695, %v358_v18  ;;  %v366_v25 = vmul.f32 1.442695, %v365_v19  ;;  %p724_p6 = scmp.lt.s32.totalorder %s976_s23, %s722_s7 }
  0x35   : > { %v373_v26 = vmul.f32 1.442695, %v372_v20  ;;  %v371_v27 = vsel %vm369_vm2, 34.241, %v364_v22  ;;  %v380_v28 = vmul.f32 1.442695, %v379_v21  ;;  %p719_p4 = pnand %p718_p3, %p898_p8 }
  0x36   : > { %703 = vpow2.f32 %v352_v23  ;;  %v378_v29 = vsel %vm376_vm3, 47.3663, %v371_v27  ;;  %v356_v40 = vsel %vm355_vm0, %v351_v17, 0.0 }
  0x37   : > { %705 = vpow2.f32 %v359_v24  ;;  %v385_v30 = vsel %vm383_vm4, 27.4869, %v378_v29  ;;  %v363_v41 = vsel %vm362_vm1, %v358_v18, %v356_v40  ;;  %p720_p5 = pneg %p719_p4 }
  0x38   : > { %707 = vpow2.f32 %v366_v25  ;;  %397 = vst [vmem:[%s336_s5] sm:$0xff] %v385_v30  ;;  %v370_v42 = vsel %vm369_vm2, %v365_v19, %v363_v41  ;;  %s428_s5 = scalar_lea.hbm %s1028_s2, %s625_s24 }
  0x39   : > { %709 = vpow2.f32 %v373_v26  ;;  %v377_v43 = vsel %vm376_vm3, %v372_v20, %v370_v42 }
  0x3a   : > { %711 = vpow2.f32 %v380_v28  ;;  %v384_v45 = vsel %vm383_vm4, %v379_v21, %v377_v43 }
  0x43   : > { %v704_v31 = vpop.eup %703 }
  0x44   : > { %v706_v32 = vpop.eup %705 }
  0x45   : > { %v708_v33 = vpop.eup %707  ;;  %v361_v34 = vadd.f32 %v706_v32, %v704_v31 }
  0x46   : > { %v710_v35 = vpop.eup %709 }
  0x47   : > { %v368_v36 = vadd.f32 %v708_v33, %v361_v34  ;;  %v712_v37 = vpop.eup %711 }
  0x49   : > { %v375_v38 = vadd.f32 %v710_v35, %v368_v36 }
  0x4b   : > { %v382_v39 = vadd.f32 %v712_v37, %v375_v38 }
  0x4d   : > { %713 = vlog2.f32 %v382_v39 }
  0x5a   : > { %v714_v44 = vpop.eup %713 }
  0x5b   : > { %v387_v46 = vmul.f32 0.6931472, %v714_v44 }
  0x5d   : > { %v388_v47 = vsub.f32 %v387_v46, %v384_v45 }
  0x5f   : > { %v389_v48 = vsub.f32 0.0, %v388_v47  ;;  %v395_v49 = vmul.f32 %v388_v47, %v385_v30 }
  0x61   : > { %v390_v50 = vmul.f32 1.442695, %v389_v48  ;;  %396 = vst [vmem:[%s328_s9] sm:$0xff] %v395_v49  ;;  %s723_s9 = scalar_lea.vmem %s722_s7, 256 }
  0x62   : > { %p725_p7 = scmp.lt.s32.totalorder %s723_s9, %s717_s19 }
  0x63   : > { %715 = vpow2.f32 %v390_v50 }
  0x64   : > { %p726_p10 = por %p725_p7, %p724_p6 }
  0x66   : > { %p727_p11 = pnand %p726_p10, %p720_p5 }
  0x70   : > { %v716_v51 = vpop.eup %715 }
  0x71   : > { %v393_v52 = vsel %vm392_vm5, %v716_v51, 2.0 }
  0x72   : > { %394 = vst [vmem:[%s292_s14] sm:$0xff] %v393_v52 }
  0x73   : > { %730 = shalt.err (!%p727_p11)
}
  0x74   : > { %s731_s10 = scalar_lea.hbm %s428_s5, 128  ;;  %s735_s13 = scalar_lea.hbm %s1028_s2, 512 }
  0x75   : > { %p732_p12 = scmp.ne.s32.totalorder %s428_s5, %s731_s10  ;;  %p736_p1 = scmp.lt.s32.totalorder %s428_s5, %s1028_s2 }
  0x76   : > { %p737_p2 = scmp.lt.s32.totalorder %s735_s13, %s731_s10 }
  0x77   : > { %p733_p13 = pnand %p732_p12, %p898_p8 }
  0x78   : > { %p738_p3 = por %p737_p2, %p736_p1 }
  0x79   : > { %p734_p0 = pneg %p733_p13 }
  0x7b   : > { %p739_p4 = pnand %p738_p3, %p734_p0 }
  0x7d   : > { %742 = shalt.err (!%p739_p4)
}
  0x7e   : > { %631 = dma.vmem_to_hbm [thread:$0]  (%p898_p8), %s976_s23, 128, %s428_s5, %s399_s6  }
  0x7f PF: > { %p637_p5 = scmp.ge.s32.totalorder %s809_s22, 2  ;;  %s448_s12 = sand.u32 1, %s781_s15  }
  0x80   : > { %s449_s27 = scalar_lea.sflag [#allocation4], %s448_s12 }
  0x81   : > { %p634_p6 = pnand %p637_p5, %p902_p9 }
  0x83   : > { %p635_p7 = pneg %p634_p6 }
  0x85   : > { %776 = dma.done.wait (%p635_p7), %s449_s27, 128  }
  0x86   : > { %778 = vsyncadd (%p635_p7), %s449_s27, 4294967168  ;;  %s18_s22 = sadd.s32 1, %s809_s22   ;;  %s1034_s15 = smov %s785_s16 }
  0x87   : > { %p15_p10 = scmp.ge.s32.totalorder %s18_s22, 6   ;;  %s1035_s16 = smov %s789_s17 }
  0x88   : > { %s1036_s17 = smov %s910_s8  ;;  %s1037_s18 = smov %s801_s20 }
  0x89   : > { %s1038_s19 = smov %s805_s21  ;;  %s1039_s20 = smov %s1042_s25 }
  0x8a   : > { %s1040_s21 = smov %s1046_s26  ;;  %17 = sbr.rel (!%p15_p10) target bundleno = 5 (0x5), region = 137 }
  0x8f   :  { %476 = vsyncpa [#allocation4], 1 }
  0x90   :  { %478 = vsyncpa [#allocation4 + $0x1], 1 }

// kernel: softmax_ce_ohem_loss.3
= control target key start
LH: loop header
LB: loop body
LE: loop exit
PB: predicated region body
PF: predicated region fallthrough
CT: control target
= control target key end

     0   :  { %s933_s0 = inlined_call_operand.<no memory space> [shape: f32[1,1], index: 0, kind: input, shape index: {}]   ;;  %s934_s1 = inlined_call_operand.hbm [shape: f32[2,16,128], index: 1, kind: input, shape index: {}]   ;;  %s935_s2 = inlined_call_operand.vmem [shape: f32[2,16,128], index: 2, kind: input, shape index: {}]   ;;  %s936_s3 = inlined_call_operand.vmem [shape: f32[2,16,128], index: 3, kind: input, shape index: {}]   ;;  %s937_s4 = inlined_call_operand.vmem [shape: f32[2,2,8,128], index: 4, kind: output, shape index: {0}]   ;;  %s938_s5 = inlined_call_operand.vmem [shape: f32[2,2,8,128], index: 5, kind: output, shape index: {1}]  }
   0x1   :  { %11 = sst [smem:[#allocation2]] %s933_s0 }
   0x2   :  { %12 = vsyncpa [#allocation4], 0 }
   0x3   :  { %14 = vsyncpa [#allocation4 + $0x1], 0  ;;  %s797_s20 = smov 0   ;;  %s799_s21 = smov 0  }
   0x4   :  { %s801_s22 = smov 0   ;;  %s803_s23 = smov 0  }
   0x5   :  { %s805_s24 = smov 0   ;;  %s807_s25 = smov 0  }
   0x6   :  { %s809_s26 = smov 0   ;;  %s811_s27 = smov 0  }
   0x7 LB: > { %s576_s0 = sadd.s32 4294967295, %s761_s27   ;;  %s35_s28 = sadd.s32 1, %s753_s25  ;;  %s761_s27 = sphi %s811_s27, %s20_s27   ;;  %s757_s26 = sphi %s809_s26, %s951_s26   ;;  %s753_s25 = sphi %s807_s25, %s950_s25   ;;  %s749_s24 = sphi %s805_s24, %s949_s24   ;;  %s745_s23 = sphi %s803_s23, %s948_s23   ;;  %s741_s22 = sphi %s801_s22, %s947_s22   ;;  %s737_s21 = sphi %s799_s21, %s946_s21   ;;  %s733_s20 = sphi %s797_s20, %s945_s20  }
   0x8   : > { %p37_p0 = scmp.ge.s32.totalorder %s35_s28, 2  ;;  %s39_s29 = sadd.s32 1, %s757_s26 }
   0x9   : > { %s71_s30 = sadd.s32 1, %s741_s22  ;;  %p78_p1 = scmp.ne.s32.totalorder %s741_s22, %s737_s21 }
   0xa   : > { %s953_s28 = smov (%p37_p0, %s35_s28), 0  ;;  %s955_s29 = smov (!%p37_p0, %s39_s29), %s757_s26 }
   0xb   : > { %s66_s6 = ssub.s32 %s753_s25, %s953_s28  ;;  %p79_p2 = scmp.eq.s32.totalorder %s761_s27, 0 }
   0xc   : > { %p41_p3 = scmp.ge.s32.totalorder %s955_s29, 2  ;;  %p84_p4 = scmp.ne.s32.totalorder %s737_s21, %s733_s20 }
   0xd   : > { %p848_p5 = por %p79_p2, %p78_p1  ;;  %p85_p6 = scmp.eq.s32.totalorder %s576_s0, 0 }
   0xe   : > { %s957_s29 = smov (%p41_p3, %s955_s29), 0  ;;  %p601_p8 = scmp.lt.s32.totalorder %s761_s27, 4 }
   0xf   : > { %941 = sst [smem:[#allocation6_spill]] %s957_s29  ;;  %p854_p7 = por %p85_p6, %p84_p4 }
  0x10   : > { %s67_s9 = ssub.s32 %s757_s26, %s957_s29  ;;  %s227_s11 = sand.u32 1, %s741_s22  }
  0x11   : > { %s68_s10 = sor.u32 %s67_s9, %s66_s6  ;;  %s580_s12 = sshll.u32 %s227_s11, 3 }
  0x12   : > { %p69_p9 = scmp.eq.s32.totalorder %s68_s10, 0  ;;  %s581_s13 = sshll.u32 %s753_s25, 1 }
  0x13   : > { %s237_s15 = sadd.s32 %s757_s26, %s581_s13  ;;  %s231_s17 = scalar_lea.vmem [#allocation3], %s580_s12 }
  0x14   : > { %s864_s14 = scalar_select %p69_p9, %s741_s22, %s71_s30  }
  0x15   : > { %s582_s16 = sshll.u32 %s237_s15, 7  ;;  %s241_s18 = sshll.u32 %s231_s17, 4  ;;  %s242_s18 = int_to_ptr.vmem [resolvable:$true] %s241_s18 }
  0x16   : > { %s239_s0 = scalar_lea.hbm %s934_s1, %s582_s16  ;;  %p874_p10 = pnand %p601_p8, %p848_p5 }
  0x17   : > { %p583_p11 = scmp.ge.s32.totalorder %s761_s27, 1  ;;  %p272_p12 = scmp.lt.s32.totalorder %s761_s27, 5 }
  0x18   : > { %s228_s30 = scalar_lea.sflag [#allocation4], %s227_s11  ;;  %p669_p13 = pneg %p874_p10 }
  0x19   : > { %s680_s6 = scalar_lea.vmem %s242_s18, 128  ;;  %s763_s9 = smov [#allocation3]  }
  0x1a   : > { %p681_p0 = scmp.ne.s32.totalorder %s242_s18, %s680_s6  ;;  %s685_s10 = sshll.u32 %s763_s9, 4  ;;  %s686_s10 = int_to_ptr.vmem [resolvable:$false] %s685_s10 }
  0x1b   : > { %s687_s12 = scalar_lea.vmem %s686_s10, 256  ;;  %p688_p3 = scmp.lt.s32.totalorder %s242_s18, %s686_s10 }
  0x1c   : > { %p683_p1 = pnand %p681_p0, %p669_p13  ;;  %p689_p4 = scmp.lt.s32.totalorder %s687_s12, %s680_s6 }
  0x1e   : > { %p684_p2 = pneg %p683_p1  ;;  %p690_p5 = por %p689_p4, %p688_p3 }
  0x20   : > { %p691_p6 = pnand %p690_p5, %p684_p2 }
  0x22   : > { %694 = shalt.err (!%p691_p6)
}
  0x23   : > { %600 = dma.hbm_to_vmem [thread:$0]  (!%p874_p10), %s239_s0, 128, %s242_s18, %s228_s30  }
  0x24   : > { %p273_p8 = pnand %p583_p11, %p272_p12 }
  0x25   : > { %s278_s7 = sand.u32 (!%p273_p8), 1, %s737_s21  }
  0x26   : > { %276 = sbr.rel (%p273_p8) target bundleno = 55 (0x37), region = 36  ;;  %s584_s11 = sshll.u32 (!%p273_p8), %s278_s7, 3 }
  0x27   : > { %s279_s13 = scalar_lea.sflag (!%p273_p8), [#allocation4], %s278_s7  ;;  %s282_s15 = scalar_lea.vmem (!%p273_p8), [#allocation3], %s584_s11 }
  0x2b   : > { %728 = dma.done.wait (%p854_p7), %s279_s13, 128  }
  0x2c   : > { %730 = vsyncadd (%p854_p7), %s279_s13, 4294967168  ;;  %p340_p9 = scmp.lt.s32.totalorder %s745_s23, 1  ;;  %p342_p10 = scmp.lt.s32.totalorder %s749_s24, 1  ;;  %v381_v0 = vld [vmem:[%s282_s15] sm:$0xff] }
  0x2d   : > { %s382_s29 = sld [smem:[#allocation2]] }
  0x2e   : > { %s959_s23 = smov (!%p340_p9, %s745_s23), 1  ;;  %s961_s24 = smov (!%p342_p10, %s749_s24), 1 }
  0x2f   : > { %s585_s16 = sshll.u32 %s959_s23, 1  ;;  %s589_s18 = sshll.u32 %s961_s24, 1 }
  0x30   : > { %s345_s17 = sadd.s32 %s585_s16, %s961_s24  ;;  %s364_s20 = sadd.s32 %s589_s18, %s959_s23 }
  0x31   : > { %s586_s19 = sshll.u32 %s345_s17, 3  ;;  %s590_s8 = sshll.u32 %s364_s20, 3 }
  0x32   : > { %s347_s6 = scalar_lea.vmem %s935_s2, %s586_s19  ;;  %s357_s12 = scalar_lea.vmem %s936_s3, %s586_s19 }
  0x33   : > { %v383_v1 = vstv %s382_s29  ;;  %v386_v2 = vld [vmem:[%s347_s6] sm:$0xff]  ;;  %s366_s13 = scalar_lea.vmem %s937_s4, %s590_s8  ;;  %s374_s16 = scalar_lea.vmem %s938_s5, %s590_s8 }
  0x34   : > { %vm384_vm0 = vcmp.le.f32.partialorder %v381_v0, %v383_v1  ;;  %v391_v4 = vld [vmem:[%s357_s12] sm:$0xff] }
  0x35   : > { %v387_v3 = vsel %vm384_vm0, %v386_v2, 0.0  ;;  %v392_v5 = vsel %vm384_vm0, %v391_v4, 0.0 }
  0x36   : > { %389 = vst [vmem:[%s366_s13] sm:$0xff] %v387_v3  ;;  %394 = vst [vmem:[%s374_s16] sm:$0xff] %v392_v5 }
  0x37 PF: > { %s20_s27 = sadd.s32 1, %s761_s27   ;;  %s944_s15 = sld [smem:[#allocation6_spill]] }
  0x38   : > { %p17_p7 = scmp.ge.s32.totalorder %s20_s27, 6   ;;  %s945_s20 = smov %s737_s21 }
  0x39   : > { %s946_s21 = smov %s741_s22  ;;  %s947_s22 = smov %s864_s14 }
  0x3a   : > { %s948_s23 = smov %s753_s25  ;;  %s949_s24 = smov %s757_s26 }
  0x3b   : > { %s950_s25 = smov %s953_s28  ;;  %19 = sbr.rel (!%p17_p7) target bundleno = 7 (0x7), region = 98 }
  0x3d   : > { %s951_s26 = smov %s944_s15 }
  0x40   :  { %444 = vsyncpa [#allocation4], 1 }
  0x41   :  { %446 = vsyncpa [#allocation4 + $0x1], 1 }

</bundles_post_ra>
